<compile_context>
chip_gen: v6e
topology: v6e:2x2x1
jax: 0.10.0
libtpu: 0.0.40
codegen_flags: <defaults>
</compile_context>

<pallas_src>
import functools

import jax
import jax.numpy as jnp
from jax import lax
from jax.experimental import pallas as pl
from jax.experimental.pallas import tpu as pltpu


def _cdiv(a, b):
    return (a + b - 1) // b


def _round_up(v, m):
    return ((v + m - 1) // m) * m


def _linear_bias_kernel(x_ref, w_ref, b_ref, out_ref, *, in_dim, block_k,
                        cast_bf16):
    """One (TM, TN) tile of  x @ W.T + b,  accumulated over the K grid axis.

    x_ref:   (TM, TK) f32 activation tile
    w_ref:   (TN, TK) f32 weight tile, PyTorch (out, in) layout
    b_ref:   (1,  TN) f32 bias row
    out_ref: (TM, TN) f32 output tile — doubles as the accumulator: its block
             index is k-invariant, so it stays resident in VMEM across K and
             is written back to HBM once per (i, j).
    """
    k = pl.program_id(2)

    @pl.when(k == 0)
    def _init():
        out_ref[...] = jnp.broadcast_to(b_ref[...], out_ref.shape)

    x_t = x_ref[...]
    w_t = w_ref[...]

    if in_dim % block_k != 0:
        # K tail: out-of-bounds columns of the edge block hold stale VMEM.
        # Zero them on BOTH operands (0 * stale-NaN would still be NaN).
        col = lax.broadcasted_iota(jnp.int32, (1, block_k), 1)
        valid = col < (in_dim - k * block_k)
        x_t = jnp.where(valid, x_t, 0.0)
        w_t = jnp.where(valid, w_t, 0.0)

    if cast_bf16:
        x_t = x_t.astype(jnp.bfloat16)
        w_t = w_t.astype(jnp.bfloat16)

    # x (TM, TK) contracted with w (TN, TK) on K -> (TM, TN); keeps the weight
    # in its native (out, in) layout so the wrapper never transposes it.
    # TODO(synk): if pl.lower_as_mlir shows a per-K-step vxpose for this NT
    # contraction, pre-transpose the weight once at parameter-load time and
    # switch to a plain jnp.dot.
    out_ref[...] += lax.dot_general(
        x_t, w_t,
        dimension_numbers=(((1,), (1,)), ((), ())),
        preferred_element_type=jnp.float32,
    )


def diagonal_gaussian(x, weight, bias, b_logstd, *,
                      tm=512, tn=512, tk=512,
                      cast_bf16=True, force_kernel=False):
    """Forward of DiagonalGaussian.

    Args:
      x:        (batch, in_dim)   float32
      weight:   (out_dim, in_dim) float32   (PyTorch nn.Linear layout)
      bias:     (out_dim,)        float32
      b_logstd: (1, out_dim)      float32
    Returns:
      (mean, std), each (batch, out_dim) — the Normal(mean, std)
      parameterization of the module's output distribution.
    """
    batch, in_dim = x.shape
    out_dim, in_dim_w = weight.shape
    assert in_dim_w == in_dim, "weight must be (out_dim, in_dim)"

    # std carries zero per-row information; compute once and broadcast lazily.
    std = jnp.broadcast_to(jnp.exp(b_logstd), (batch, out_dim)).astype(x.dtype)

    # Small-shape fast path: pallas_call launch + compile overhead dwarfs the
    # matmul for tiny heads; XLA's fused dot is strictly faster there.
    if not force_kernel and batch * out_dim * in_dim <= (1 << 17):
        mean = (x @ weight.T + bias).astype(x.dtype)
        return mean, std

    # ---- tile selection ----------------------------------------------------
    # TM: cover the whole batch when it fits so W streams from HBM exactly
    # once (grid_M == 1).  A full-dim block needs no 8-alignment.
    if batch <= tm:
        TM = batch
    else:
        TM = tm                                   # default tm is a multiple of 8

    # TN: full out_dim when it fits; but keep >= 2 N blocks when the batch
    # collapsed to a single M block so v7x's second TensorCore has work.
    if out_dim <= tn:
        if batch <= tm and out_dim >= 256:
            TN = _round_up(_cdiv(out_dim, 2), 128)
        else:
            TN = out_dim                          # full-dim block
    else:
        TN = tn                                   # multiple of 128

    # TK: full in_dim when it fits (no K tail -> no in-kernel masking).
    TK = in_dim if in_dim <= tk else tk

    grid = (_cdiv(batch, TM), _cdiv(out_dim, TN), _cdiv(in_dim, TK))

    kernel = functools.partial(_linear_bias_kernel, in_dim=in_dim, block_k=TK,
                               cast_bf16=cast_bf16)

    itemsize = jnp.dtype(x.dtype).itemsize
    cost = pl.CostEstimate(
        flops=2 * batch * out_dim * in_dim,
        transcendentals=0,
        bytes_accessed=(x.size + weight.size + bias.size + batch * out_dim)
        * itemsize,
    )

    grid_spec = pltpu.PrefetchScalarGridSpec(
        num_scalar_prefetch=0,
        grid=grid,
        in_specs=[
            pl.BlockSpec((TM, TK), lambda i, j, k: (i, k)),   # x
            pl.BlockSpec((TN, TK), lambda i, j, k: (j, k)),   # W (out, in)
            pl.BlockSpec((1, TN), lambda i, j, k: (0, j)),    # bias row
        ],
        out_specs=pl.BlockSpec((TM, TN), lambda i, j, k: (i, j)),
    )

    mean = pl.pallas_call(
        kernel,
        out_shape=jax.ShapeDtypeStruct((batch, out_dim), jnp.float32),
        grid_spec=grid_spec,
        compiler_params=pltpu.CompilerParams(
            dimension_semantics=("parallel", "parallel", "arbitrary")),
        cost_estimate=cost,
    )(x, weight, bias.reshape(1, out_dim))

    return mean.astype(x.dtype), std


if __name__ == "__main__":
    key = jax.random.PRNGKey(0)
    k_x, k_w, k_b = jax.random.split(key, 3)

    batch, in_dim, out_dim = 8, 32, 16

    # Deterministic params mimicking nn.Linear defaults: U(+-1/sqrt(in_dim)).
    bound = 1.0 / (in_dim ** 0.5)
    weight = jax.random.uniform(k_w, (out_dim, in_dim), jnp.float32,
                                minval=-bound, maxval=bound)
    bias = jax.random.uniform(k_b, (out_dim,), jnp.float32,
                              minval=-bound, maxval=bound)
    b_logstd = jnp.zeros((1, out_dim), jnp.float32)  # torch.zeros(1, out_dim)

    x = jax.random.normal(k_x, (batch, in_dim), jnp.float32)

    # Plain-JAX reference.
    mean_ref = x @ weight.T + bias
    std_ref = jnp.broadcast_to(jnp.exp(b_logstd), mean_ref.shape)

    # Exact f32 kernel path.
    mean_f32, std_f32 = diagonal_gaussian(x, weight, bias, b_logstd,
                                          cast_bf16=False, force_kernel=True)
    jax.block_until_ready((mean_f32, std_f32))
    assert jnp.allclose(mean_f32, mean_ref, atol=1e-5, rtol=1e-5), "f32 mean mismatch"
    assert jnp.allclose(std_f32, std_ref, atol=1e-6, rtol=1e-6), "std mismatch"

    # Default bf16-MXU kernel path (looser tolerance: bf16 mantissa).
    mean_bf, std_bf = diagonal_gaussian(x, weight, bias, b_logstd,
                                        force_kernel=True)
    jax.block_until_ready((mean_bf, std_bf))
    assert jnp.allclose(mean_bf, mean_ref, atol=5e-2, rtol=5e-2), "bf16 mean mismatch"

    # TODO(synk): torch.distributions.Normal object itself has no Pallas
    # equivalent; the kernel returns its (mean, std) parameterization.
    print("KERNEL_OK")
</pallas_src>

<mosaic_0001>
module attributes {stable_mosaic.version = 11 : i64} {
  func.func @_linear_bias_kernel(%arg0: i32, %arg1: i32, %arg2: i32, %arg3: memref<8x32xf32, #tpu.memory_space<vmem>>, %arg4: memref<16x32xf32, #tpu.memory_space<vmem>>, %arg5: memref<1x16xf32, #tpu.memory_space<vmem>>, %arg6: memref<8x16xf32, #tpu.memory_space<vmem>>) attributes {dimension_semantics = [#tpu.dimension_semantics<parallel>, #tpu.dimension_semantics<parallel>, #tpu.dimension_semantics<arbitrary>], iteration_bounds = array<i64: 1, 1, 1>, scalar_prefetch = 0 : i64, scratch_operands = 0 : i64, tpu.core_type = #tpu.core_type<tc>, window_params = [{transform_indices = @transform_0, window_bounds = array<i64: 8, 32>}, {transform_indices = @transform_1, window_bounds = array<i64: 16, 32>}, {transform_indices = @transform_2, window_bounds = array<i64: 1, 16>}, {transform_indices = @transform_3, window_bounds = array<i64: 8, 16>}]} {
    %c0_i32 = arith.constant 0 : i32
    %0 = arith.cmpi eq, %arg2, %c0_i32 : i32
    %1 = arith.extui %0 : i1 to i32
    %c0_i32_0 = arith.constant 0 : i32
    %2 = arith.cmpi ne, %1, %c0_i32_0 : i32
    scf.if %2 {
      %c0_8 = arith.constant 0 : index
      %c0_9 = arith.constant 0 : index
      %9 = vector.load %arg5[%c0_8, %c0_9] : memref<1x16xf32, #tpu.memory_space<vmem>>, vector<1x16xf32>
      %10 = vector.shape_cast %9 : vector<1x16xf32> to vector<1x16xf32>
      %11 = vector.broadcast %10 : vector<1x16xf32> to vector<8x16xf32>
      %c0_10 = arith.constant 0 : index
      %c0_11 = arith.constant 0 : index
      %12 = vector.load %arg6[%c0_10, %c0_11] : memref<8x16xf32, #tpu.memory_space<vmem>>, vector<8x16xf32>
      tpu.vector_store %arg6[%c0_10, %c0_11], %11 {strides = array<i32>} : memref<8x16xf32, #tpu.memory_space<vmem>>, vector<8x16xf32>,
    } else {
    }
    %c0 = arith.constant 0 : index
    %c0_1 = arith.constant 0 : index
    %3 = vector.load %arg3[%c0, %c0_1] : memref<8x32xf32, #tpu.memory_space<vmem>>, vector<8x32xf32>
    %c0_2 = arith.constant 0 : index
    %c0_3 = arith.constant 0 : index
    %4 = vector.load %arg4[%c0_2, %c0_3] : memref<16x32xf32, #tpu.memory_space<vmem>>, vector<16x32xf32>
    %c0_4 = arith.constant 0 : index
    %c0_5 = arith.constant 0 : index
    %5 = vector.load %arg6[%c0_4, %c0_5] : memref<8x16xf32, #tpu.memory_space<vmem>>, vector<8x16xf32>
    %cst = arith.constant dense<0.000000e+00> : vector<8x16xf32>
    %6 = tpu.matmul %3, %4, %cst {dimension_numbers = #tpu.dot_dimension_numbers<[1], [1], [0], [0], [0, 0, 1, 0], [], []>} : vector<8x32xf32>, vector<16x32xf32>, vector<8x16xf32> -> vector<8x16xf32>
    %7 = arith.addf %5, %6 : vector<8x16xf32>
    %c0_6 = arith.constant 0 : index
    %c0_7 = arith.constant 0 : index
    %8 = vector.load %arg6[%c0_6, %c0_7] : memref<8x16xf32, #tpu.memory_space<vmem>>, vector<8x16xf32>
    tpu.vector_store %arg6[%c0_6, %c0_7], %7 {strides = array<i32>} : memref<8x16xf32, #tpu.memory_space<vmem>>, vector<8x16xf32>,
    return
  }
  func.func @transform_0(%arg0: i32, %arg1: i32, %arg2: i32) -> (i32, i32) {
    %c0_i32 = arith.constant 0 : i32
    return %arg0, %arg2 : i32, i32
  }
  func.func @transform_1(%arg0: i32, %arg1: i32, %arg2: i32) -> (i32, i32) {
    %c0_i32 = arith.constant 0 : i32
    return %arg1, %arg2 : i32, i32
  }
  func.func @transform_2(%arg0: i32, %arg1: i32, %arg2: i32) -> (i32, i32) {
    %c0_i32 = arith.constant 0 : i32
    %c0_i32_0 = arith.constant 0 : i32
    return %c0_i32, %arg1 : i32, i32
  }
  func.func @transform_3(%arg0: i32, %arg1: i32, %arg2: i32) -> (i32, i32) {
    %c0_i32 = arith.constant 0 : i32
    return %arg0, %arg1 : i32, i32
  }
}

</mosaic_0001>

<bundles_post_ra>
// kernel: tpu_custom_call.1
= control target key start
LH: loop header
LB: loop body
LE: loop exit
PB: predicated region body
PF: predicated region fallthrough
CT: control target
= control target key end

     0   :  { %8 = vsyncpa [#allocation3], 0  ;;  %s285_s0 = inlined_call_operand.hbm [shape: f32[8,32], index: 0, kind: input, shape index: {}]   ;;  %s286_s1 = inlined_call_operand.hbm [shape: f32[16,32], index: 1, kind: input, shape index: {}]   ;;  %s287_s2 = inlined_call_operand.vmem [shape: f32[1,16], index: 2, kind: input, shape index: {}]   ;;  %s288_s3 = inlined_call_operand.hbm [shape: f32[8,16], index: 3, kind: output, shape index: {}]  }
   0x1   :  { %9 = vsyncpa [#allocation6], 0 }
   0x2   :  { %10 = vsyncpa [#allocation4], 0  ;;  %s244_s12 = smov [#allocation2]   ;;  %s245_s14 = smov [#allocation5]  }
   0x3   :  { %s17_s13 = sshll.u32 %s244_s12, 4  ;;  %s26_s15 = sshll.u32 %s245_s14, 4  ;;  %s18_s13 = int_to_ptr.vmem [resolvable:$true] %s17_s13  ;;  %s27_s15 = int_to_ptr.vmem [resolvable:$true] %s26_s15 }
   0x4   :  { %s186_s16 = scalar_lea.vmem %s18_s13, 128  ;;  %p191_p1 = scmp.lt.s32.totalorder %s18_s13, %s18_s13 }
   0x5   :  { %p187_p0 = scmp.ne.s32.totalorder %s18_s13, %s186_s16  ;;  %p192_p2 = scmp.lt.s32.totalorder %s186_s16, %s186_s16 }
   0x7   :  { %p193_p3 = por %p192_p2, %p191_p1 }
   0x9   :  { %p194_p4 = pnand %p193_p3, %p187_p0 }
   0xb   :  { %197 = shalt.err (!%p194_p4)
}
   0xc   :  { %20 = dma.hbm_to_vmem [thread:$0]  %s285_s0, 128, %s18_s13, [#allocation3]  }
   0xd   :  { %s206_s19 = scalar_lea.vmem %s27_s15, 256  ;;  %p211_p6 = scmp.lt.s32.totalorder %s27_s15, %s27_s15 }
   0xe   :  { %p207_p5 = scmp.ne.s32.totalorder %s27_s15, %s206_s19  ;;  %p212_p7 = scmp.lt.s32.totalorder %s206_s19, %s206_s19 }
  0x10   :  { %p213_p8 = por %p212_p7, %p211_p6 }
  0x12   :  { %p214_p9 = pnand %p213_p8, %p207_p5 }
  0x14   :  { %217 = shalt.err (!%p214_p9)
}
  0x15   :  { %s246_s20 = smov 128   ;;  %s247_s21 = smov 8  }
  0x16   :  { %32 = dma.hbm_to_vmem [thread:$0]  %s286_s1, 256, %s27_s15, [#allocation6], %s246_s20, %s246_s20, %s247_s21  }
  0x17   :  { %238 = dma.done.wait [#allocation3], 128  }
  0x18   :  { %239 = vsyncadd [#allocation3], 4294967168 }
  0x19   :  { %240 = dma.done.wait [#allocation6], 256  }
  0x1a   :  { %241 = vsyncadd [#allocation6], 4294967040  ;;  %v248_v0 = vmov 0.0   ;;  %vm249_vm0 = vmmov 0   ;;  %vm52_vm1 = vcmask 130048   ;;  %vm58_vm2 = vcmask 261120  }
  0x1b   :  { %164 = vmatprep.subr.mxu0 %v248_v0  ;;  %168 = vmatprep.mubr.msk.f32.mxu0 %vm249_vm0, %v248_v0  ;;  %v157_v1 = vld [vmem:[%s287_s2] ss:$0 sm:$0xff]  ;;  %v56_v2 = vld [vmem:[#allocation5 + $0x8] sm:$0xff]  ;;  %v55_v3 = vld [vmem:[#allocation5] sm:$0xff]  ;;  %s250_s1 = smov [#allocation7]  }
  0x1c   :  { %53 = vst.msk [vmem:[#allocation7] sm:$0xff] %vm52_vm1, %v157_v1  ;;  %165 = vmatpush3.xpose.msk.msra.mxu0 %vm58_vm2, %v56_v2  ;;  %v54_v4 = vld [vmem:[#allocation2] sm:$0xff]  ;;  %s147_s25 = sshll.u32 %s250_s1, 4  ;;  %s148_s25 = int_to_ptr.vmem [resolvable:$true] %s147_s25 }
  0x1d   :  { %166 = vmatprep.subr.mxu0 %v248_v0  ;;  %s218_s26 = scalar_lea.vmem %s148_s25, 128  ;;  %p223_p11 = scmp.lt.s32.totalorder %s148_s25, %s148_s25 }
  0x1e   :  { %p219_p10 = scmp.ne.s32.totalorder %s148_s25, %s218_s26  ;;  %p224_p12 = scmp.lt.s32.totalorder %s218_s26, %s218_s26 }
  0x20   :  { %167 = vmatpush3.xpose.msk.msra.mxu0 %vm58_vm2, %v55_v3  ;;  %p225_p13 = por %p224_p12, %p223_p11 }
  0x22   :  { %p226_p0 = pnand %p225_p13, %p219_p10 }
  0x23   :  { %169 = vmatmul.mubr.msk.f32.vlgmr.msra.gmra.mxu0 %vm58_vm2, %v54_v4  ;;  %v57_v5 = vld [vmem:[#allocation7] sm:$0xff] }
  0xe3   :  { %v134_v6 = vpop.f32.mrf.mxu0 }
  0xe4   :  { %v138_v7 = vadd.f32 %v134_v6, %v57_v5 }
  0xe5   :  { %v170_v8 = vpop.f32.mrf.mxu0 }
  0xe6   :  { %140 = vst.msk [vmem:[#allocation7] sm:$0xff] %vm52_vm1, %v138_v7 }
  0xe7   :  { %229 = shalt.err (!%p226_p0)
}
  0xe8   :  { %150 = dma.vmem_to_hbm [thread:$0]  %s148_s25, 128, %s288_s3, [#allocation4]  }
  0xe9   :  { %242 = dma.done.wait [#allocation4], 128  }
  0xea   :  { %243 = vsyncadd [#allocation4], 4294967168 }
  0xeb   :  { %154 = vsyncpa [#allocation3], 1 }
  0xec   :  { %155 = vsyncpa [#allocation6], 1 }
  0xed   :  { %156 = vsyncpa [#allocation4], 1 }

</bundles_post_ra>
